<compile_context>
chip_gen: v7x
topology: tpu7x:2x2x1
jax: 0.10.0
libtpu: 0.0.40
codegen_flags: <defaults>
</compile_context>

<pallas_src>
from typing import NamedTuple

import jax
import jax.numpy as jnp
from jax.experimental import pallas as pl
from jax.experimental.pallas import tpu as pltpu

_LANE = 128        # lane width: pad feature dims to multiples of this
_SUBLANE = 8       # f32 sublane: pad batch tiles to multiples of this
_MAX_TILE_B = 512  # review: 512-1024 reaches ~85% of HBM roofline vs ~63% at 256


def _round_up(n, m):
    return ((n + m - 1) // m) * m


def _cdiv(a, b):
    return -(-a // b)


def _pad2(a, rows, cols):
    return jnp.pad(a, ((0, rows - a.shape[0]), (0, cols - a.shape[1])))


def _choose_tile_b(B):
    """Pick the batch tile.

    Aim for >= 2 grid steps (so the "parallel" axis spans both v7x TCs) while
    keeping per-tile size <= _MAX_TILE_B and batch-padding overshoot small.
    """
    n_tiles = max(2, _cdiv(B, _MAX_TILE_B))
    tile = _round_up(_cdiv(B, n_tiles), _SUBLANE)
    return max(tile, _SUBLANE)


class PreparedParams(NamedTuple):
    w1: jax.Array       # (pd_in, dp)   compute dtype
    wstack: jax.Array   # (n_layers-1, dp, dp) compute dtype  (fc2..fc6, padded)
    bstack: jax.Array   # (n_layers, dp) float32              (b1..b6, padded)
    d_in: int
    out_dim: int


def prepare_params(params, compute_dtype=jnp.float32):
    """One-time pad/cast of parameters into the kernel layout.

    params: list of (W, b), W: (in, out), b: (1, out).  All layer widths are
    zero-padded to a common 128-lane multiple; padded rows/cols/biases are
    zero so the math is unchanged.  compute_dtype=jnp.bfloat16 halves weight
    DMA and uses the bf16 MXU path (accumulation stays f32) but will not meet
    a 1e-4 tolerance against an f32 reference.
    """
    d_in = params[0][0].shape[0]
    out_dim = params[-1][0].shape[1]
    pd_in = _round_up(d_in, _LANE)
    dp = _round_up(max(w.shape[1] for w, _ in params), _LANE)

    w1 = _pad2(params[0][0].astype(jnp.float32), pd_in, dp).astype(compute_dtype)
    wstack = jnp.stack([
        _pad2(w.astype(jnp.float32), dp, dp).astype(compute_dtype)
        for w, _ in params[1:]
    ])
    bstack = jnp.stack([
        jnp.pad(b.astype(jnp.float32).reshape(-1), (0, dp - b.size))
        for _, b in params
    ])
    return PreparedParams(w1, wstack, bstack, d_in, out_dim)


def mlp_kernel(x_ref, w1_ref, wstack_ref, bstack_ref, o_ref):
    """Forward pass of the MLP on one (TILE_B, pd_in) batch tile.

    All matmul dims are pre-padded to 128-lane multiples, so every jnp.dot is
    a clean MXU tile and the final store is lane-dense.  Dots accumulate in
    f32; bias-add / ReLU stay f32 (v5e has no bf16 VALU); activations are
    carried in the compute dtype between layers.
    """
    act_dtype = x_ref.dtype
    n_stack = wstack_ref.shape[0]  # fc2..fc_last

    def layer(h, w, b, relu):
        y = jnp.dot(h, w, preferred_element_type=jnp.float32) + b
        if relu:
            y = jnp.maximum(y, 0.0)
        return y

    # fc1 + ReLU
    h = layer(x_ref[...], w1_ref[...], bstack_ref[0:1, :], True).astype(act_dtype)
    # fc2 .. fc5 + ReLU (weights VMEM-resident in the stacked tensor)
    for li in range(n_stack - 1):
        h = layer(h, wstack_ref[li], bstack_ref[li + 1:li + 2, :], True).astype(act_dtype)
    # fc6: no activation
    y = layer(h, wstack_ref[n_stack - 1], bstack_ref[n_stack:n_stack + 1, :], False)
    o_ref[...] = y.astype(o_ref.dtype)


def original_net_forward(x, prepared: PreparedParams):
    """x: (B, C, H, W); prepared: output of prepare_params()."""
    B = x.shape[0]
    x_flat = x.reshape(B, -1)                      # same as x.view(B, -1)
    d_in = x_flat.shape[1]
    assert d_in == prepared.d_in, "input feature size mismatch"

    compute_dtype = prepared.w1.dtype
    pd_in, dp = prepared.w1.shape

    tile_b = _choose_tile_b(B)
    b_pad = _round_up(B, tile_b)
    grid = (b_pad // tile_b,)

    # Skip the extra HBM round-trip when x already matches the kernel layout.
    if b_pad == B and pd_in == d_in and x_flat.dtype == compute_dtype:
        x_p = x_flat
    else:
        x_p = _pad2(x_flat.astype(compute_dtype), b_pad, pd_in)

    out = pl.pallas_call(
        mlp_kernel,
        out_shape=jax.ShapeDtypeStruct((b_pad, dp), jnp.float32),
        grid=grid,
        in_specs=[
            # activations: tiled along batch, software-pipelined
            pl.BlockSpec((tile_b, pd_in), lambda i: (i, 0)),
            # parameters: constant index_map -> fetched once, VMEM-resident
            pl.BlockSpec(prepared.w1.shape, lambda i: (0, 0)),
            pl.BlockSpec(prepared.wstack.shape, lambda i: (0, 0, 0)),
            pl.BlockSpec(prepared.bstack.shape, lambda i: (0, 0)),
        ],
        out_specs=pl.BlockSpec((tile_b, dp), lambda i: (i, 0)),
        compiler_params=pltpu.CompilerParams(
            dimension_semantics=("parallel",),
            vmem_limit_bytes=32 * 1024 * 1024,
        ),
    )(x_p, prepared.w1, prepared.wstack, prepared.bstack)

    # Strip batch / lane padding (glue, outside the kernel).
    return out[:B, :prepared.out_dim]


def init_params(key, input_size, hidden_sizes, output_size):
    """Deterministic init. Weights stored as (in, out); bias as (1, out)."""
    sizes = [input_size] + list(hidden_sizes) + [output_size]
    params = []
    for i in range(len(sizes) - 1):
        key, kw, kb = jax.random.split(key, 3)
        fan_in, fan_out = sizes[i], sizes[i + 1]
        scale = 1.0 / jnp.sqrt(jnp.float32(fan_in))
        w = jax.random.uniform(kw, (fan_in, fan_out), jnp.float32, -scale, scale)
        b = jax.random.uniform(kb, (1, fan_out), jnp.float32, -scale, scale)
        params.append((w, b))
    return params


def reference_forward(x, params):
    """Pure-JAX reference mirroring the PyTorch forward."""
    h = x.reshape(x.shape[0], -1).astype(jnp.float32)
    for i, (w, b) in enumerate(params):
        h = h @ w + b
        if i < len(params) - 1:
            h = jnp.maximum(h, 0.0)
    return h


if __name__ == "__main__":
    key = jax.random.PRNGKey(0)
    kx, kp = jax.random.split(key)

    # Small shapes consistent with the module's forward (NCHW input, flattened).
    B, C, H, W = 2, 4, 16, 16
    input_size = C * H * W                       # 1024
    hidden_sizes = [128, 64, 64, 32, 32]
    output_size = 16

    x = jax.random.normal(kx, (B, C, H, W), jnp.float32)
    params = init_params(kp, input_size, hidden_sizes, output_size)

    # One-time parameter prep (pad + stack + cast), hoisted out of the forward.
    prepared = prepare_params(params, compute_dtype=jnp.float32)

    out = original_net_forward(x, prepared)
    out = jax.block_until_ready(out)

    ref = reference_forward(x, params)
    assert out.shape == (B, output_size)
    assert jnp.allclose(out, ref, atol=1e-4, rtol=1e-4)

    print("KERNEL_OK")
</pallas_src>

<mosaic_0001>
module attributes {stable_mosaic.version = 11 : i64} {
  func.func @mlp_kernel(%arg0: i32, %arg1: memref<8x1024xf32, #tpu.memory_space<vmem>>, %arg2: memref<1024x128xf32, #tpu.memory_space<vmem>>, %arg3: memref<5x128x128xf32, #tpu.memory_space<vmem>>, %arg4: memref<6x128xf32, #tpu.memory_space<vmem>>, %arg5: memref<8x128xf32, #tpu.memory_space<vmem>>) attributes {dimension_semantics = [#tpu.dimension_semantics<parallel>], iteration_bounds = array<i64: 1>, scalar_prefetch = 0 : i64, scratch_operands = 0 : i64, tpu.core_type = #tpu.core_type<tc>, window_params = [{transform_indices = @transform_0, window_bounds = array<i64: 8, 1024>}, {pipeline_mode = #tpu.pipeline_mode<synchronous>, transform_indices = @transform_1, window_bounds = array<i64: 1024, 128>}, {pipeline_mode = #tpu.pipeline_mode<synchronous>, transform_indices = @transform_2, window_bounds = array<i64: 5, 128, 128>}, {pipeline_mode = #tpu.pipeline_mode<synchronous>, transform_indices = @transform_3, window_bounds = array<i64: 6, 128>}, {transform_indices = @transform_4, window_bounds = array<i64: 8, 128>}]} {
    %c0 = arith.constant 0 : index
    %c0_0 = arith.constant 0 : index
    %0 = vector.load %arg1[%c0, %c0_0] : memref<8x1024xf32, #tpu.memory_space<vmem>>, vector<8x1024xf32>
    %c0_1 = arith.constant 0 : index
    %c0_2 = arith.constant 0 : index
    %1 = vector.load %arg2[%c0_1, %c0_2] : memref<1024x128xf32, #tpu.memory_space<vmem>>, vector<1024x128xf32>
    %c0_3 = arith.constant 0 : index
    %c0_4 = arith.constant 0 : index
    %2 = vector.load %arg4[%c0_3, %c0_4] : memref<6x128xf32, #tpu.memory_space<vmem>>, vector<1x128xf32>
    %cst = arith.constant dense<0.000000e+00> : vector<8x128xf32>
    %3 = tpu.matmul %0, %1, %cst {dimension_numbers = #tpu.dot_dimension_numbers<[1], [0], [0], [1], [0, 0, 1, 1], [], []>} : vector<8x1024xf32>, vector<1024x128xf32>, vector<8x128xf32> -> vector<8x128xf32>
    %4 = vector.broadcast %2 : vector<1x128xf32> to vector<8x128xf32>
    %5 = arith.addf %3, %4 : vector<8x128xf32>
    %cst_5 = arith.constant 0.000000e+00 : f32
    %6 = vector.broadcast %cst_5 : f32 to vector<8x128xf32>
    %7 = arith.maximumf %5, %6 : vector<8x128xf32>
    %c0_6 = arith.constant 0 : index
    %c0_7 = arith.constant 0 : index
    %c0_8 = arith.constant 0 : index
    %8 = vector.load %arg3[%c0_6, %c0_7, %c0_8] : memref<5x128x128xf32, #tpu.memory_space<vmem>>, vector<1x128x128xf32>
    %9 = vector.shape_cast %8 : vector<1x128x128xf32> to vector<128x128xf32>
    %c1 = arith.constant 1 : index
    %c0_9 = arith.constant 0 : index
    %10 = vector.load %arg4[%c1, %c0_9] : memref<6x128xf32, #tpu.memory_space<vmem>>, vector<1x128xf32>
    %cst_10 = arith.constant dense<0.000000e+00> : vector<8x128xf32>
    %11 = tpu.matmul %7, %9, %cst_10 {dimension_numbers = #tpu.dot_dimension_numbers<[1], [0], [0], [1], [0, 0, 1, 1], [], []>} : vector<8x128xf32>, vector<128x128xf32>, vector<8x128xf32> -> vector<8x128xf32>
    %12 = vector.broadcast %10 : vector<1x128xf32> to vector<8x128xf32>
    %13 = arith.addf %11, %12 : vector<8x128xf32>
    %cst_11 = arith.constant 0.000000e+00 : f32
    %14 = vector.broadcast %cst_11 : f32 to vector<8x128xf32>
    %15 = arith.maximumf %13, %14 : vector<8x128xf32>
    %c1_12 = arith.constant 1 : index
    %c0_13 = arith.constant 0 : index
    %c0_14 = arith.constant 0 : index
    %16 = vector.load %arg3[%c1_12, %c0_13, %c0_14] : memref<5x128x128xf32, #tpu.memory_space<vmem>>, vector<1x128x128xf32>
    %17 = vector.shape_cast %16 : vector<1x128x128xf32> to vector<128x128xf32>
    %c2 = arith.constant 2 : index
    %c0_15 = arith.constant 0 : index
    %18 = vector.load %arg4[%c2, %c0_15] : memref<6x128xf32, #tpu.memory_space<vmem>>, vector<1x128xf32>
    %cst_16 = arith.constant dense<0.000000e+00> : vector<8x128xf32>
    %19 = tpu.matmul %15, %17, %cst_16 {dimension_numbers = #tpu.dot_dimension_numbers<[1], [0], [0], [1], [0, 0, 1, 1], [], []>} : vector<8x128xf32>, vector<128x128xf32>, vector<8x128xf32> -> vector<8x128xf32>
    %20 = vector.broadcast %18 : vector<1x128xf32> to vector<8x128xf32>
    %21 = arith.addf %19, %20 : vector<8x128xf32>
    %cst_17 = arith.constant 0.000000e+00 : f32
    %22 = vector.broadcast %cst_17 : f32 to vector<8x128xf32>
    %23 = arith.maximumf %21, %22 : vector<8x128xf32>
    %c2_18 = arith.constant 2 : index
    %c0_19 = arith.constant 0 : index
    %c0_20 = arith.constant 0 : index
    %24 = vector.load %arg3[%c2_18, %c0_19, %c0_20] : memref<5x128x128xf32, #tpu.memory_space<vmem>>, vector<1x128x128xf32>
    %25 = vector.shape_cast %24 : vector<1x128x128xf32> to vector<128x128xf32>
    %c3 = arith.constant 3 : index
    %c0_21 = arith.constant 0 : index
    %26 = vector.load %arg4[%c3, %c0_21] : memref<6x128xf32, #tpu.memory_space<vmem>>, vector<1x128xf32>
    %cst_22 = arith.constant dense<0.000000e+00> : vector<8x128xf32>
    %27 = tpu.matmul %23, %25, %cst_22 {dimension_numbers = #tpu.dot_dimension_numbers<[1], [0], [0], [1], [0, 0, 1, 1], [], []>} : vector<8x128xf32>, vector<128x128xf32>, vector<8x128xf32> -> vector<8x128xf32>
    %28 = vector.broadcast %26 : vector<1x128xf32> to vector<8x128xf32>
    %29 = arith.addf %27, %28 : vector<8x128xf32>
    %cst_23 = arith.constant 0.000000e+00 : f32
    %30 = vector.broadcast %cst_23 : f32 to vector<8x128xf32>
    %31 = arith.maximumf %29, %30 : vector<8x128xf32>
    %c3_24 = arith.constant 3 : index
    %c0_25 = arith.constant 0 : index
    %c0_26 = arith.constant 0 : index
    %32 = vector.load %arg3[%c3_24, %c0_25, %c0_26] : memref<5x128x128xf32, #tpu.memory_space<vmem>>, vector<1x128x128xf32>
    %33 = vector.shape_cast %32 : vector<1x128x128xf32> to vector<128x128xf32>
    %c4 = arith.constant 4 : index
    %c0_27 = arith.constant 0 : index
    %34 = vector.load %arg4[%c4, %c0_27] : memref<6x128xf32, #tpu.memory_space<vmem>>, vector<1x128xf32>
    %cst_28 = arith.constant dense<0.000000e+00> : vector<8x128xf32>
    %35 = tpu.matmul %31, %33, %cst_28 {dimension_numbers = #tpu.dot_dimension_numbers<[1], [0], [0], [1], [0, 0, 1, 1], [], []>} : vector<8x128xf32>, vector<128x128xf32>, vector<8x128xf32> -> vector<8x128xf32>
    %36 = vector.broadcast %34 : vector<1x128xf32> to vector<8x128xf32>
    %37 = arith.addf %35, %36 : vector<8x128xf32>
    %cst_29 = arith.constant 0.000000e+00 : f32
    %38 = vector.broadcast %cst_29 : f32 to vector<8x128xf32>
    %39 = arith.maximumf %37, %38 : vector<8x128xf32>
    %c4_30 = arith.constant 4 : index
    %c0_31 = arith.constant 0 : index
    %c0_32 = arith.constant 0 : index
    %40 = vector.load %arg3[%c4_30, %c0_31, %c0_32] : memref<5x128x128xf32, #tpu.memory_space<vmem>>, vector<1x128x128xf32>
    %41 = vector.shape_cast %40 : vector<1x128x128xf32> to vector<128x128xf32>
    %c5 = arith.constant 5 : index
    %c0_33 = arith.constant 0 : index
    %42 = vector.load %arg4[%c5, %c0_33] : memref<6x128xf32, #tpu.memory_space<vmem>>, vector<1x128xf32>
    %cst_34 = arith.constant dense<0.000000e+00> : vector<8x128xf32>
    %43 = tpu.matmul %39, %41, %cst_34 {dimension_numbers = #tpu.dot_dimension_numbers<[1], [0], [0], [1], [0, 0, 1, 1], [], []>} : vector<8x128xf32>, vector<128x128xf32>, vector<8x128xf32> -> vector<8x128xf32>
    %44 = vector.broadcast %42 : vector<1x128xf32> to vector<8x128xf32>
    %45 = arith.addf %43, %44 : vector<8x128xf32>
    %c0_35 = arith.constant 0 : index
    %c0_36 = arith.constant 0 : index
    %46 = vector.load %arg5[%c0_35, %c0_36] : memref<8x128xf32, #tpu.memory_space<vmem>>, vector<8x128xf32>
    tpu.vector_store %arg5[%c0_35, %c0_36], %45 {strides = array<i32>} : memref<8x128xf32, #tpu.memory_space<vmem>>, vector<8x128xf32>,
    return
  }
  func.func @transform_0(%arg0: i32) -> (i32, i32) {
    %c0_i32 = arith.constant 0 : i32
    %c0_i32_0 = arith.constant 0 : i32
    return %arg0, %c0_i32 : i32, i32
  }
  func.func @transform_1(%arg0: i32) -> (i32, i32) {
    %c0_i32 = arith.constant 0 : i32
    %c0_i32_0 = arith.constant 0 : i32
    %c0_i32_1 = arith.constant 0 : i32
    return %c0_i32, %c0_i32_0 : i32, i32
  }
  func.func @transform_2(%arg0: i32) -> (i32, i32, i32) {
    %c0_i32 = arith.constant 0 : i32
    %c0_i32_0 = arith.constant 0 : i32
    %c0_i32_1 = arith.constant 0 : i32
    %c0_i32_2 = arith.constant 0 : i32
    return %c0_i32, %c0_i32_0, %c0_i32_1 : i32, i32, i32
  }
  func.func @transform_3(%arg0: i32) -> (i32, i32) {
    %c0_i32 = arith.constant 0 : i32
    %c0_i32_0 = arith.constant 0 : i32
    %c0_i32_1 = arith.constant 0 : i32
    return %c0_i32, %c0_i32_0 : i32, i32
  }
  func.func @transform_4(%arg0: i32) -> (i32, i32) {
    %c0_i32 = arith.constant 0 : i32
    %c0_i32_0 = arith.constant 0 : i32
    return %arg0, %c0_i32 : i32, i32
  }
}

</mosaic_0001>

<bundles_post_ra>
// kernel: tpu_custom_call.1
= control target key start
LH: loop header
LB: loop body
LE: loop exit
PB: predicated region body
PF: predicated region fallthrough
CT: control target
= control target key end

     0   :  { %9 = vsyncpa [#allocation3], 0  ;;  %s1872_s0 = inlined_call_operand.hbm [shape: f32[8,1024], index: 0, kind: input, shape index: {}]   ;;  %s1873_s1 = inlined_call_operand.hbm [shape: f32[1024,128], index: 1, kind: input, shape index: {}]   ;;  %s1874_s2 = inlined_call_operand.hbm [shape: f32[5,128,128], index: 2, kind: input, shape index: {}]   ;;  %s1875_s3 = inlined_call_operand.vmem [shape: f32[6,128], index: 3, kind: input, shape index: {}]   ;;  %s1876_s4 = inlined_call_operand.hbm [shape: f32[8,128], index: 4, kind: output, shape index: {}]  }
   0x1   :  { %10 = vsyncpa [#allocation6], 0 }
   0x2   :  { %11 = vsyncpa [#allocation4], 0  ;;  %s1716_s15 = smov [#allocation5]   ;;  %s1622_s19 = scalar_lea.hbm %s1873_s1, 16384 }
   0x3   :  { %s27_s16 = sshll.u32 %s1716_s15, 4  ;;  %p1623_p0 = scmp.ne.s32.totalorder %s1873_s1, %s1622_s19  ;;  %s28_s16 = int_to_ptr.vmem [resolvable:$true] %s27_s16 }
   0x4   :  { %p1626_p1 = scmp.lt.u32.totalorder %s1622_s19, %s1873_s1 }
   0x6   :  { %p1628_p2 = pnand %p1626_p1, %p1623_p0 }
   0x8   :  { %1631 = shalt.err (!%p1628_p2)
}
   0x9   :  { %s1632_s24 = scalar_lea.vmem %s28_s16, 16384  ;;  %p1637_p4 = scmp.lt.s32.totalorder %s28_s16, %s28_s16 }
   0xa   :  { %p1633_p3 = scmp.ne.s32.totalorder %s28_s16, %s1632_s24  ;;  %p1638_p5 = scmp.lt.s32.totalorder %s1632_s24, %s1632_s24 }
   0xc   :  { %p1639_p6 = por %p1638_p5, %p1637_p4 }
   0xe   :  { %p1640_p7 = pnand %p1639_p6, %p1633_p3 }
  0x10   :  { %1643 = shalt.err (!%p1640_p7)
}
  0x11   :  { %s1717_s25 = smov 128   ;;  %s1718_s26 = smov 8  }
  0x12   :  { %33 = dma.hbm_to_vmem [thread:$0]  %s1873_s1, 16384, %s28_s16, [#allocation6], %s1717_s25, %s1717_s25, %s1718_s26  }
  0x13   :  { %s1719_s29 = smov [#allocation2]   ;;  %s1720_s5 = smov [#allocation7]  }
  0x14   :  { %s18_s30 = sshll.u32 %s1719_s29, 4  ;;  %s39_s6 = sshll.u32 %s1720_s5, 4  ;;  %s19_s30 = int_to_ptr.vmem [resolvable:$true] %s18_s30  ;;  %s40_s6 = int_to_ptr.vmem [resolvable:$true] %s39_s6 }
  0x15   :  { %s1644_s9 = scalar_lea.hbm %s1872_s0, 1024 }
  0x16   :  { %p1645_p8 = scmp.ne.s32.totalorder %s1872_s0, %s1644_s9  ;;  %p1648_p9 = scmp.lt.u32.totalorder %s1644_s9, %s1872_s0 }
  0x18   :  { %p1650_p10 = pnand %p1648_p9, %p1645_p8 }
  0x1a   :  { %1653 = shalt.err (!%p1650_p10)
}
  0x1b   :  { %s1654_s1 = scalar_lea.vmem %s19_s30, 1024  ;;  %p1659_p12 = scmp.lt.s32.totalorder %s19_s30, %s19_s30 }
  0x1c   :  { %p1655_p11 = scmp.ne.s32.totalorder %s19_s30, %s1654_s1  ;;  %p1660_p13 = scmp.lt.s32.totalorder %s1654_s1, %s1654_s1 }
  0x1e   :  { %p1661_p0 = por %p1660_p13, %p1659_p12 }
  0x20   :  { %p1662_p1 = pnand %p1661_p0, %p1655_p11 }
  0x22   :  { %1665 = shalt.err (!%p1662_p1)
}
  0x23   :  { %21 = dma.hbm_to_vmem [thread:$0]  %s1872_s0, 1024, %s19_s30, [#allocation3]  }
  0x24   :  { %s1666_s18 = scalar_lea.hbm %s1874_s2, 10240 }
  0x25   :  { %p1667_p2 = scmp.ne.s32.totalorder %s1874_s2, %s1666_s18  ;;  %p1670_p3 = scmp.lt.u32.totalorder %s1666_s18, %s1874_s2 }
  0x27   :  { %p1672_p4 = pnand %p1670_p3, %p1667_p2 }
  0x29   :  { %1675 = shalt.err (!%p1672_p4)
}
  0x2a   :  { %s1676_s23 = scalar_lea.vmem %s40_s6, 10240  ;;  %p1681_p6 = scmp.lt.s32.totalorder %s40_s6, %s40_s6 }
  0x2b   :  { %p1677_p5 = scmp.ne.s32.totalorder %s40_s6, %s1676_s23  ;;  %p1682_p7 = scmp.lt.s32.totalorder %s1676_s23, %s1676_s23 }
  0x2d   :  { %p1683_p8 = por %p1682_p7, %p1681_p6 }
  0x2f   :  { %p1684_p9 = pnand %p1683_p8, %p1677_p5 }
  0x31   :  { %1687 = shalt.err (!%p1684_p9)
}
  0x32   :  { %45 = dma.hbm_to_vmem [thread:$0]  %s1874_s2, 10240, %s40_s6, [#allocation6], %s1717_s25, %s1717_s25, %s1718_s26  }
  0x33   :  { %1710 = dma.done.wait [#allocation3], 1024  }
  0x34   :  { %1711 = vsyncadd [#allocation3], 4294966272 }
  0x35   :  { %1712 = dma.done.wait [#allocation6], 26624  }
  0x36   :  { %1713 = vsyncadd [#allocation6], 4294940672  ;;  %v81_v0 = vld [vmem:[#allocation5 + $0x80] sm:$0xff]  ;;  %v82_v1 = vld [vmem:[#allocation5 + $0x88] sm:$0xff]  ;;  %vm1722_vm0 = vmmov 0   ;;  %s1724_s10 = smov [#allocation8]  }
  0x37   :  { %v65_v2 = vld [vmem:[#allocation5] sm:$0xff]  ;;  %v1365_v3 = vpack.c.bf16 %v82_v1, %v81_v0  ;;  %v66_v4 = vld [vmem:[#allocation5 + $0x8] sm:$0xff]  ;;  %v83_v11 = vld [vmem:[#allocation5 + $0x90] sm:$0xff]  ;;  %s949_s11 = sshll.u32 %s1724_s10, 4  ;;  %s950_s11 = int_to_ptr.vmem [resolvable:$true] %s949_s11 }
  0x38   :  { %v113_v5 = vld [vmem:[#allocation5 + $0x180] sm:$0xff]  ;;  %v114_v6 = vld [vmem:[#allocation5 + $0x188] sm:$0xff]  ;;  %v1367_v7 = vpack.c.bf16 %v66_v4, %v65_v2  ;;  %v84_v13 = vld [vmem:[#allocation5 + $0x98] sm:$0xff]  ;;  %s1688_s12 = scalar_lea.vmem %s950_s11, 128  ;;  %p1693_p11 = scmp.lt.s32.totalorder %s950_s11, %s950_s11 }
  0x39   :  { %v1397_v8 = vpack.c.bf16 %v114_v6, %v113_v5  ;;  %v97_v9 = vld [vmem:[#allocation5 + $0x100] sm:$0xff]  ;;  %v98_v10 = vld [vmem:[#allocation5 + $0x108] sm:$0xff]  ;;  %1366 = vmatprep.subr.bf16.mxu0 %v1365_v3  ;;  %v67_v14 = vld [vmem:[#allocation5 + $0x10] sm:$0xff]  ;;  %v1369_v16 = vpack.c.bf16 %v84_v13, %v83_v11  ;;  %p1689_p10 = scmp.ne.s32.totalorder %s950_s11, %s1688_s12  ;;  %p1694_p12 = scmp.lt.s32.totalorder %s1688_s12, %s1688_s12 }
  0x3a   :  { %v1399_v12 = vpack.c.bf16 %v98_v10, %v97_v9  ;;  %v68_v15 = vld [vmem:[#allocation5 + $0x18] sm:$0xff]  ;;  %1368 = vmatpush3.bf16.msra.mxu0 %v1367_v7  ;;  %v115_v18 = vld [vmem:[#allocation5 + $0x190] sm:$0xff]  ;;  %v85_v23 = vld [vmem:[#allocation5 + $0xa0] sm:$0xff] }
  0x3b   :  { %1398 = vmatprep.subr.bf16.mxu1 %v1397_v8  ;;  %v1371_v17 = vpack.c.bf16 %v68_v15, %v67_v14  ;;  %v116_v19 = vld [vmem:[#allocation5 + $0x198] sm:$0xff]  ;;  %v99_v20 = vld [vmem:[#allocation5 + $0x110] sm:$0xff]  ;;  %v86_v24 = vld [vmem:[#allocation5 + $0xa8] sm:$0xff]  ;;  %1370 = vmatprep.subr.bf16.mxu0 %v1369_v16  ;;  %p1695_p13 = por %p1694_p12, %p1693_p11 }
  0x3c   :  { %1400 = vmatpush3.bf16.msra.mxu1 %v1399_v12  ;;  %v1401_v21 = vpack.c.bf16 %v116_v19, %v115_v18  ;;  %v100_v22 = vld [vmem:[#allocation5 + $0x118] sm:$0xff]  ;;  %v1373_v26 = vpack.c.bf16 %v86_v24, %v85_v23  ;;  %v69_v27 = vld [vmem:[#allocation5 + $0x20] sm:$0xff]  ;;  %v70_v28 = vld [vmem:[#allocation5 + $0x28] sm:$0xff] }
  0x3d   :  { %v1403_v25 = vpack.c.bf16 %v100_v22, %v99_v20  ;;  %v117_v29 = vld [vmem:[#allocation5 + $0x1a0] sm:$0xff]  ;;  %v118_v30 = vld [vmem:[#allocation5 + $0x1a8] sm:$0xff]  ;;  %v1375_v33 = vpack.c.bf16 %v70_v28, %v69_v27  ;;  %v87_v35 = vld [vmem:[#allocation5 + $0xb0] sm:$0xff]  ;;  %p1696_p0 = pnand %p1695_p13, %p1689_p10 }
  0x3e   :  { %1402 = vmatprep.subr.bf16.mxu1 %v1401_v21  ;;  %v101_v31 = vld [vmem:[#allocation5 + $0x120] sm:$0xff]  ;;  %v102_v32 = vld [vmem:[#allocation5 + $0x128] sm:$0xff]  ;;  %1372 = vmatpush3.bf16.msra.mxu0 %v1371_v17  ;;  %v1405_v34 = vpack.c.bf16 %v118_v30, %v117_v29  ;;  %v88_v36 = vld [vmem:[#allocation5 + $0xb8] sm:$0xff] }
  0x3f   :  { %v71_v37 = vld [vmem:[#allocation5 + $0x30] sm:$0xff]  ;;  %1374 = vmatprep.subr.bf16.mxu0 %v1373_v26  ;;  %v1407_v38 = vpack.c.bf16 %v102_v32, %v101_v31  ;;  %v1377_v39 = vpack.c.bf16 %v88_v36, %v87_v35  ;;  %v72_v40 = vld [vmem:[#allocation5 + $0x38] sm:$0xff]  ;;  %v89_v46 = vld [vmem:[#allocation5 + $0xc0] sm:$0xff] }
  0x40   :  { %1404 = vmatpush3.bf16.msra.mxu1 %v1403_v25  ;;  %v119_v41 = vld [vmem:[#allocation5 + $0x1b0] sm:$0xff]  ;;  %v120_v42 = vld [vmem:[#allocation5 + $0x1b8] sm:$0xff]  ;;  %v90_v47 = vld [vmem:[#allocation5 + $0xc8] sm:$0xff]  ;;  %v1379_v48 = vpack.c.bf16 %v72_v40, %v71_v37 }
  0x41   :  { %1406 = vmatprep.subr.bf16.mxu1 %v1405_v34  ;;  %v1409_v43 = vpack.c.bf16 %v120_v42, %v119_v41  ;;  %v103_v44 = vld [vmem:[#allocation5 + $0x130] sm:$0xff]  ;;  %v104_v45 = vld [vmem:[#allocation5 + $0x138] sm:$0xff]  ;;  %v121_v49 = vld [vmem:[#allocation5 + $0x1c0] sm:$0xff]  ;;  %v1381_v52 = vpack.c.bf16 %v90_v47, %v89_v46 }
  0x42   :  { %1376 = vmatpush3.bf16.msra.mxu0 %v1375_v33  ;;  %v122_v50 = vld [vmem:[#allocation5 + $0x1c8] sm:$0xff]  ;;  %v1411_v51 = vpack.c.bf16 %v104_v45, %v103_v44  ;;  %v73_v53 = vld [vmem:[#allocation5 + $0x40] sm:$0xff]  ;;  %v91_v58 = vld [vmem:[#allocation5 + $0xd0] sm:$0xff] }
  0x43   :  { %1378 = vmatprep.subr.bf16.mxu0 %v1377_v39  ;;  %v74_v54 = vld [vmem:[#allocation5 + $0x48] sm:$0xff]  ;;  %v105_v55 = vld [vmem:[#allocation5 + $0x140] sm:$0xff]  ;;  %v1413_v56 = vpack.c.bf16 %v122_v50, %v121_v49  ;;  %v92_v59 = vld [vmem:[#allocation5 + $0xd8] sm:$0xff] }
  0x44   :  { %1408 = vmatpush3.bf16.msra.mxu1 %v1407_v38  ;;  %v106_v57 = vld [vmem:[#allocation5 + $0x148] sm:$0xff]  ;;  %v123_v60 = vld [vmem:[#allocation5 + $0x1d0] sm:$0xff]  ;;  %v124_v61 = vld [vmem:[#allocation5 + $0x1d8] sm:$0xff]  ;;  %v1383_v62 = vpack.c.bf16 %v74_v54, %v73_v53  ;;  %v1385_v0 = vpack.c.bf16 %v92_v59, %v91_v58 }
  0x45   :  { %1410 = vmatprep.subr.bf16.mxu1 %v1409_v43  ;;  %v1415_v63 = vpack.c.bf16 %v106_v57, %v105_v55  ;;  %v75_v1 = vld [vmem:[#allocation5 + $0x50] sm:$0xff]  ;;  %v76_v2 = vld [vmem:[#allocation5 + $0x58] sm:$0xff]  ;;  %v1417_v4 = vpack.c.bf16 %v124_v61, %v123_v60  ;;  %v93_v6 = vld [vmem:[#allocation5 + $0xe0] sm:$0xff] }
  0x46   :  { %1380 = vmatpush3.bf16.msra.mxu0 %v1379_v48  ;;  %v107_v3 = vld [vmem:[#allocation5 + $0x150] sm:$0xff]  ;;  %v108_v5 = vld [vmem:[#allocation5 + $0x158] sm:$0xff]  ;;  %v94_v7 = vld [vmem:[#allocation5 + $0xe8] sm:$0xff]  ;;  %v1387_v10 = vpack.c.bf16 %v76_v2, %v75_v1 }
  0x47   :  { %1382 = vmatprep.subr.bf16.mxu0 %v1381_v52  ;;  %v125_v8 = vld [vmem:[#allocation5 + $0x1e0] sm:$0xff]  ;;  %v126_v9 = vld [vmem:[#allocation5 + $0x1e8] sm:$0xff]  ;;  %v1419_v13 = vpack.c.bf16 %v108_v5, %v107_v3  ;;  %v1389_v14 = vpack.c.bf16 %v94_v7, %v93_v6  ;;  %v95_v19 = vld [vmem:[#allocation5 + $0xf0] sm:$0xff] }
  0x48   :  { %1412 = vmatpush3.bf16.msra.mxu1 %v1411_v51  ;;  %v77_v11 = vld [vmem:[#allocation5 + $0x60] sm:$0xff]  ;;  %v78_v12 = vld [vmem:[#allocation5 + $0x68] sm:$0xff]  ;;  %v1421_v18 = vpack.c.bf16 %v126_v9, %v125_v8  ;;  %v96_v20 = vld [vmem:[#allocation5 + $0xf8] sm:$0xff] }
  0x49   :  { %1414 = vmatprep.subr.bf16.mxu1 %v1413_v56  ;;  %v109_v15 = vld [vmem:[#allocation5 + $0x160] sm:$0xff]  ;;  %v110_v16 = vld [vmem:[#allocation5 + $0x168] sm:$0xff]  ;;  %v60_v21 = vld [vmem:[#allocation2 + $0x18] sm:$0xff]  ;;  %v1391_v24 = vpack.c.bf16 %v78_v12, %v77_v11  ;;  %v1393_v26 = vpack.c.bf16 %v96_v20, %v95_v19 }
  0x4a   :  { %1384 = vmatpush3.bf16.msra.mxu0 %v1383_v62  ;;  %v58_v17 = vld [vmem:[#allocation2 + $0x8] sm:$0xff]  ;;  %v127_v22 = vld [vmem:[#allocation5 + $0x1f0] sm:$0xff]  ;;  %v128_v23 = vld [vmem:[#allocation5 + $0x1f8] sm:$0xff]  ;;  %332 = vmatprep.mubr.f32.mxu1 %v60_v21  ;;  %v1423_v25 = vpack.c.bf16 %v110_v16, %v109_v15 }
  0x4b   :  { %1386 = vmatprep.subr.bf16.mxu0 %v1385_v0  ;;  %262 = vmatprep.mubr.f32.mxu0 %v58_v17  ;;  %v79_v27 = vld [vmem:[#allocation5 + $0x70] sm:$0xff]  ;;  %v80_v28 = vld [vmem:[#allocation5 + $0x78] sm:$0xff]  ;;  %v1425_v30 = vpack.c.bf16 %v128_v23, %v127_v22  ;;  %v145_v32 = vld [vmem:[#allocation5 + $0x280] sm:$0xff] }
  0x4c   :  { %1416 = vmatpush3.bf16.msra.mxu1 %v1415_v63  ;;  %v111_v29 = vld [vmem:[#allocation5 + $0x170] sm:$0xff]  ;;  %v112_v31 = vld [vmem:[#allocation5 + $0x178] sm:$0xff]  ;;  %v146_v33 = vld [vmem:[#allocation5 + $0x288] sm:$0xff]  ;;  %v1395_v36 = vpack.c.bf16 %v80_v28, %v79_v27 }
  0x4d   :  { %1418 = vmatprep.subr.bf16.mxu1 %v1417_v4  ;;  %v177_v34 = vld [vmem:[#allocation5 + $0x380] sm:$0xff]  ;;  %v178_v35 = vld [vmem:[#allocation5 + $0x388] sm:$0xff]  ;;  %v1427_v37 = vpack.c.bf16 %v112_v31, %v111_v29  ;;  %v1429_v38 = vpack.c.bf16 %v146_v33, %v145_v32  ;;  %v147_v44 = vld [vmem:[#allocation5 + $0x290] sm:$0xff] }
  0x4e   :  { %1388 = vmatpush3.bf16.msra.mxu0 %v1387_v10  ;;  %v129_v39 = vld [vmem:[#allocation5 + $0x200] sm:$0xff]  ;;  %v130_v40 = vld [vmem:[#allocation5 + $0x208] sm:$0xff]  ;;  %v1461_v42 = vpack.c.bf16 %v178_v35, %v177_v34  ;;  %v148_v45 = vld [vmem:[#allocation5 + $0x298] sm:$0xff] }
  0x4f   :  { %1390 = vmatprep.subr.bf16.mxu0 %v1389_v14  ;;  %v161_v41 = vld [vmem:[#allocation5 + $0x300] sm:$0xff]  ;;  %v162_v43 = vld [vmem:[#allocation5 + $0x308] sm:$0xff]  ;;  %v179_v46 = vld [vmem:[#allocation5 + $0x390] sm:$0xff]  ;;  %v1431_v49 = vpack.c.bf16 %v130_v40, %v129_v39  ;;  %v1433_v52 = vpack.c.bf16 %v148_v45, %v147_v44 }
  0x50   :  { %1420 = vmatpush3.bf16.msra.mxu1 %v1419_v13  ;;  %v180_v47 = vld [vmem:[#allocation5 + $0x398] sm:$0xff]  ;;  %v57_v48 = vld [vmem:[#allocation2] sm:$0xff]  ;;  %v59_v50 = vld [vmem:[#allocation2 + $0x10] sm:$0xff]  ;;  %v1463_v51 = vpack.c.bf16 %v162_v43, %v161_v41 }
  0x51   :  { %1422 = vmatprep.subr.bf16.mxu1 %v1421_v18  ;;  %v131_v53 = vld [vmem:[#allocation5 + $0x210] sm:$0xff]  ;;  %v132_v54 = vld [vmem:[#allocation5 + $0x218] sm:$0xff]  ;;  %v1465_v56 = vpack.c.bf16 %v180_v47, %v179_v46  ;;  %v149_v58 = vld [vmem:[#allocation5 + $0x2a0] sm:$0xff] }
  0x52   :  { %1392 = vmatpush3.bf16.msra.mxu0 %v1391_v24  ;;  %v163_v55 = vld [vmem:[#allocation5 + $0x310] sm:$0xff]  ;;  %v164_v57 = vld [vmem:[#allocation5 + $0x318] sm:$0xff]  ;;  %v150_v59 = vld [vmem:[#allocation5 + $0x2a8] sm:$0xff]  ;;  %v1435_v62 = vpack.c.bf16 %v132_v54, %v131_v53 }
  0x53   :  { %1394 = vmatprep.subr.bf16.mxu0 %v1393_v26  ;;  %v181_v60 = vld [vmem:[#allocation5 + $0x3a0] sm:$0xff]  ;;  %v182_v61 = vld [vmem:[#allocation5 + $0x3a8] sm:$0xff]  ;;  %v1467_v63 = vpack.c.bf16 %v164_v57, %v163_v55  ;;  %v1437_v0 = vpack.c.bf16 %v150_v59, %v149_v58  ;;  %v151_v6 = vld [vmem:[#allocation5 + $0x2b0] sm:$0xff] }
  0x54   :  { %1424 = vmatpush3.bf16.msra.mxu1 %v1423_v25  ;;  %v133_v1 = vld [vmem:[#allocation5 + $0x220] sm:$0xff]  ;;  %v134_v2 = vld [vmem:[#allocation5 + $0x228] sm:$0xff]  ;;  %v1469_v4 = vpack.c.bf16 %v182_v61, %v181_v60  ;;  %v152_v7 = vld [vmem:[#allocation5 + $0x2b8] sm:$0xff] }
  0x55   :  { %1426 = vmatprep.subr.bf16.mxu1 %v1425_v30  ;;  %v165_v3 = vld [vmem:[#allocation5 + $0x320] sm:$0xff]  ;;  %v166_v5 = vld [vmem:[#allocation5 + $0x328] sm:$0xff]  ;;  %v183_v8 = vld [vmem:[#allocation5 + $0x3b0] sm:$0xff]  ;;  %v1439_v10 = vpack.c.bf16 %v134_v2, %v133_v1  ;;  %v1441_v12 = vpack.c.bf16 %v152_v7, %v151_v6 }
  0x56   :  { %1396 = vmatpush3.bf16.msra.mxu0 %v1395_v36  ;;  %v184_v9 = vld [vmem:[#allocation5 + $0x3b8] sm:$0xff]  ;;  %v1471_v11 = vpack.c.bf16 %v166_v5, %v165_v3  ;;  %v135_v13 = vld [vmem:[#allocation5 + $0x230] sm:$0xff]  ;;  %v153_v18 = vld [vmem:[#allocation5 + $0x2c0] sm:$0xff] }
  0x57   :  { %1430 = vmatprep.subr.bf16.mxu0 %v1429_v38  ;;  %v136_v14 = vld [vmem:[#allocation5 + $0x238] sm:$0xff]  ;;  %v167_v15 = vld [vmem:[#allocation5 + $0x330] sm:$0xff]  ;;  %v1473_v16 = vpack.c.bf16 %v184_v9, %v183_v8  ;;  %v154_v19 = vld [vmem:[#allocation5 + $0x2c8] sm:$0xff] }
  0x58   :  { %1428 = vmatpush3.bf16.msra.mxu1 %v1427_v37  ;;  %v168_v17 = vld [vmem:[#allocation5 + $0x338] sm:$0xff]  ;;  %v185_v20 = vld [vmem:[#allocation5 + $0x3c0] sm:$0xff]  ;;  %v186_v21 = vld [vmem:[#allocation5 + $0x3c8] sm:$0xff]  ;;  %v1443_v22 = vpack.c.bf16 %v136_v14, %v135_v13  ;;  %v1445_v26 = vpack.c.bf16 %v154_v19, %v153_v18 }
  0x59   :  { %1462 = vmatprep.subr.bf16.mxu1 %v1461_v42  ;;  %263 = vmatmul.mubr.f32.vlgmr.msra.gmra.mrb[0].mxu0 %v57_v48  ;;  %v62_v23 = vld [vmem:[#allocation2 + $0x28] sm:$0xff]  ;;  %v64_v24 = vld [vmem:[#allocation2 + $0x38] sm:$0xff]  ;;  %v1475_v25 = vpack.c.bf16 %v168_v17, %v167_v15  ;;  %v137_v27 = vld [vmem:[#allocation5 + $0x240] sm:$0xff]  ;;  %v1477_v30 = vpack.c.bf16 %v186_v21, %v185_v20 }
  0x5a   :  { %1432 = vmatpush3.bf16.msra.mxu0 %v1431_v49  ;;  %v138_v28 = vld [vmem:[#allocation5 + $0x248] sm:$0xff]  ;;  %v169_v29 = vld [vmem:[#allocation5 + $0x340] sm:$0xff]  ;;  %v155_v32 = vld [vmem:[#allocation5 + $0x2d0] sm:$0xff]  ;;  %402 = vmatprep.mubr.f32.mxu0 %v62_v23 }
  0x5b   :  { %333 = vmatmul.mubr.f32.vlgmr.msra.gmra.mrb[0].mxu1 %v59_v50  ;;  %1434 = vmatprep.subr.bf16.mxu0 %v1433_v52  ;;  %v170_v31 = vld [vmem:[#allocation5 + $0x348] sm:$0xff]  ;;  %v156_v33 = vld [vmem:[#allocation5 + $0x2d8] sm:$0xff]  ;;  %v187_v34 = vld [vmem:[#allocation5 + $0x3d0] sm:$0xff]  ;;  %v1447_v36 = vpack.c.bf16 %v138_v28, %v137_v27 }
  0x5c   :  { %1464 = vmatpush3.bf16.msra.mxu1 %v1463_v51  ;;  %v188_v35 = vld [vmem:[#allocation5 + $0x3d8] sm:$0xff]  ;;  %472 = vmatprep.mubr.f32.mxu1 %v64_v24  ;;  %v1479_v37 = vpack.c.bf16 %v170_v31, %v169_v29  ;;  %v1449_v38 = vpack.c.bf16 %v156_v33, %v155_v32  ;;  %v139_v39 = vld [vmem:[#allocation5 + $0x250] sm:$0xff]  ;;  %v157_v44 = vld [vmem:[#allocation5 + $0x2e0] sm:$0xff]  ;;  %v1723_v33 = vmov 0.0  }
  0x5d   :  { %1466 = vmatprep.subr.bf16.mxu1 %v1465_v56  ;;  %v140_v40 = vld [vmem:[#allocation5 + $0x258] sm:$0xff]  ;;  %v171_v41 = vld [vmem:[#allocation5 + $0x350] sm:$0xff]  ;;  %v1481_v42 = vpack.c.bf16 %v188_v35, %v187_v34  ;;  %v158_v45 = vld [vmem:[#allocation5 + $0x2e8] sm:$0xff] }
  0x5e   :  { %1436 = vmatpush3.bf16.msra.mxu0 %v1435_v62  ;;  %v172_v43 = vld [vmem:[#allocation5 + $0x358] sm:$0xff]  ;;  %v189_v46 = vld [vmem:[#allocation5 + $0x3e0] sm:$0xff]  ;;  %v190_v47 = vld [vmem:[#allocation5 + $0x3e8] sm:$0xff]  ;;  %v1451_v48 = vpack.c.bf16 %v140_v40, %v139_v39  ;;  %v1453_v50 = vpack.c.bf16 %v158_v45, %v157_v44 }
  0x5f   :  { %1438 = vmatprep.subr.bf16.mxu0 %v1437_v0  ;;  %v1483_v49 = vpack.c.bf16 %v172_v43, %v171_v41  ;;  %v141_v51 = vld [vmem:[#allocation5 + $0x260] sm:$0xff]  ;;  %v142_v52 = vld [vmem:[#allocation5 + $0x268] sm:$0xff]  ;;  %v1485_v54 = vpack.c.bf16 %v190_v47, %v189_v46  ;;  %v159_v56 = vld [vmem:[#allocation5 + $0x2f0] sm:$0xff] }
  0x60   :  { %1468 = vmatpush3.bf16.msra.mxu1 %v1467_v63  ;;  %v173_v53 = vld [vmem:[#allocation5 + $0x360] sm:$0xff]  ;;  %v174_v55 = vld [vmem:[#allocation5 + $0x368] sm:$0xff]  ;;  %v160_v57 = vld [vmem:[#allocation5 + $0x2f8] sm:$0xff]  ;;  %v1455_v60 = vpack.c.bf16 %v142_v52, %v141_v51 }
  0x61   :  { %1470 = vmatprep.subr.bf16.mxu1 %v1469_v4  ;;  %v191_v58 = vld [vmem:[#allocation5 + $0x3f0] sm:$0xff]  ;;  %v192_v59 = vld [vmem:[#allocation5 + $0x3f8] sm:$0xff]  ;;  %v1487_v61 = vpack.c.bf16 %v174_v55, %v173_v53  ;;  %v1457_v62 = vpack.c.bf16 %v160_v57, %v159_v56  ;;  %v61_v6 = vld [vmem:[#allocation2 + $0x20] sm:$0xff] }
  0x62   :  { %1440 = vmatpush3.bf16.msra.mxu0 %v1439_v10  ;;  %v143_v63 = vld [vmem:[#allocation5 + $0x270] sm:$0xff]  ;;  %v144_v0 = vld [vmem:[#allocation5 + $0x278] sm:$0xff]  ;;  %v1489_v1 = vpack.c.bf16 %v192_v59, %v191_v58  ;;  %v479_v8 = vld [vmem:[#allocation7] sm:$0xff] }
  0x63   :  { %1442 = vmatprep.subr.bf16.mxu0 %v1441_v12  ;;  %v175_v2 = vld [vmem:[#allocation5 + $0x370] sm:$0xff]  ;;  %v176_v3 = vld [vmem:[#allocation5 + $0x378] sm:$0xff]  ;;  %v1459_v4 = vpack.c.bf16 %v144_v0, %v143_v63  ;;  %v480_v9 = vld [vmem:[#allocation7 + $0x8] sm:$0xff] }
  0x64   :  { %1472 = vmatpush3.bf16.msra.mxu1 %v1471_v11  ;;  %v1491_v5 = vpack.c.bf16 %v176_v3, %v175_v2  ;;  %v63_v7 = vld [vmem:[#allocation2 + $0x30] sm:$0xff]  ;;  %v1721_v11 = vmov 0.0|0.0   ;;  %v1494_v12 = vpack.c.bf16 %v480_v9, %v479_v8  ;;  %v482_v13 = vld [vmem:[#allocation7 + $0x18] sm:$0xff]  ;;  %v483_v15 = vld [vmem:[#allocation7 + $0x20] sm:$0xff] }
  0x65   :  { %1474 = vmatprep.subr.bf16.mxu1 %v1473_v16  ;;  %v481_v10 = vld [vmem:[#allocation7 + $0x10] sm:$0xff]  ;;  %v484_v16 = vld [vmem:[#allocation7 + $0x28] sm:$0xff]  ;;  %v486_v19 = vld [vmem:[#allocation7 + $0x38] sm:$0xff] }
  0x66   :  { %1444 = vmatpush3.bf16.msra.mxu0 %v1443_v22  ;;  %v1497_v14 = vpack.c.bf16 %v482_v13, %v481_v10  ;;  %v1500_v17 = vpack.c.bf16 %v484_v16, %v483_v15  ;;  %v485_v18 = vld [vmem:[#allocation7 + $0x30] sm:$0xff]  ;;  %v487_v21 = vld [vmem:[#allocation7 + $0x40] sm:$0xff]  ;;  %v488_v22 = vld [vmem:[#allocation7 + $0x48] sm:$0xff] }
  0x67   :  { %1446 = vmatprep.subr.bf16.mxu0 %v1445_v26  ;;  %v1503_v20 = vpack.c.bf16 %v486_v19, %v485_v18  ;;  %v1506_v23 = vpack.c.bf16 %v488_v22, %v487_v21  ;;  %v489_v24 = vld [vmem:[#allocation7 + $0x50] sm:$0xff]  ;;  %v491_v27 = vld [vmem:[#allocation7 + $0x60] sm:$0xff]  ;;  %v492_v28 = vld [vmem:[#allocation7 + $0x68] sm:$0xff] }
  0x68   :  { %1476 = vmatpush3.bf16.msra.mxu1 %v1475_v25  ;;  %v490_v25 = vld [vmem:[#allocation7 + $0x58] sm:$0xff]  ;;  %v1512_v29 = vpack.c.bf16 %v492_v28, %v491_v27  ;;  %v572_v34 = vld [vmem:[#allocation7 + $0x80] sm:$0xff]  ;;  %v573_v35 = vld [vmem:[#allocation7 + $0x88] sm:$0xff] }
  0x69   :  { %1478 = vmatprep.subr.bf16.mxu1 %v1477_v30  ;;  %v1509_v26 = vpack.c.bf16 %v490_v25, %v489_v24  ;;  %v493_v30 = vld [vmem:[#allocation7 + $0x70] sm:$0xff]  ;;  %v494_v31 = vld [vmem:[#allocation7 + $0x78] sm:$0xff]  ;;  %v576_v40 = vld [vmem:[#allocation7 + $0xa0] sm:$0xff] }
  0x6a   :  { %1448 = vmatpush3.bf16.msra.mxu0 %v1447_v36  ;;  %v1515_v32 = vpack.c.bf16 %v494_v31, %v493_v30  ;;  %v574_v36 = vld [vmem:[#allocation7 + $0x90] sm:$0xff]  ;;  %v577_v41 = vld [vmem:[#allocation7 + $0xa8] sm:$0xff]  ;;  %v579_v44 = vld [vmem:[#allocation7 + $0xb8] sm:$0xff] }
  0x6b   :  { %1450 = vmatprep.subr.bf16.mxu0 %v1449_v38  ;;  %v575_v38 = vld [vmem:[#allocation7 + $0x98] sm:$0xff]  ;;  %v578_v43 = vld [vmem:[#allocation7 + $0xb0] sm:$0xff]  ;;  %v580_v46 = vld [vmem:[#allocation7 + $0xc0] sm:$0xff] }
  0x6c   :  { %1480 = vmatpush3.bf16.msra.mxu1 %v1479_v37  ;;  %v1518_v37 = vpack.c.bf16 %v573_v35, %v572_v34  ;;  %v1521_v39 = vpack.c.bf16 %v575_v38, %v574_v36  ;;  %v1527_v45 = vpack.c.bf16 %v579_v44, %v578_v43  ;;  %v581_v47 = vld [vmem:[#allocation7 + $0xc8] sm:$0xff]  ;;  %v584_v52 = vld [vmem:[#allocation7 + $0xe0] sm:$0xff]  ;;  %v586_v9 = vld [vmem:[#allocation7 + $0xf0] sm:$0xff] }
  0x6d   :  { %1482 = vmatprep.subr.bf16.mxu1 %v1481_v42  ;;  %v1524_v42 = vpack.c.bf16 %v577_v41, %v576_v40  ;;  %v585_v53 = vld [vmem:[#allocation7 + $0xe8] sm:$0xff]  ;;  %v959_v56 = vld [vmem:[%s1875_s3] ss:$0 sm:$0xff]  ;;  %v587_v10 = vld [vmem:[#allocation7 + $0xf8] sm:$0xff] }
  0x6e   :  { %1452 = vmatpush3.bf16.msra.mxu0 %v1451_v48  ;;  %v1530_v48 = vpack.c.bf16 %v581_v47, %v580_v46  ;;  %v665_v13 = vld [vmem:[#allocation7 + $0x100] sm:$0xff]  ;;  %v667_v15 = vld [vmem:[#allocation7 + $0x110] sm:$0xff]  ;;  %v680_v41 = vld [vmem:[#allocation7 + $0x178] sm:$0xff] }
  0x6f   :  { %1454 = vmatprep.subr.bf16.mxu0 %v1453_v50  ;;  %v583_v50 = vld [vmem:[#allocation7 + $0xd8] sm:$0xff]  ;;  %v669_v19 = vld [vmem:[#allocation7 + $0x120] sm:$0xff]  ;;  %v671_v22 = vld [vmem:[#allocation7 + $0x130] sm:$0xff] }
  0x70   :  { %1484 = vmatpush3.bf16.msra.mxu1 %v1483_v49  ;;  %v582_v49 = vld [vmem:[#allocation7 + $0xd0] sm:$0xff]  ;;  %v673_v25 = vld [vmem:[#allocation7 + $0x140] sm:$0xff]  ;;  %v759_v44 = vld [vmem:[#allocation7 + $0x188] sm:$0xff] }
  0x71   :  { %1486 = vmatprep.subr.bf16.mxu1 %v1485_v54  ;;  %v1533_v51 = vpack.c.bf16 %v583_v50, %v582_v49  ;;  %v1536_v54 = vpack.c.bf16 %v585_v53, %v584_v52  ;;  %v675_v28 = vld [vmem:[#allocation7 + $0x150] sm:$0xff]  ;;  %v677_v31 = vld [vmem:[#allocation7 + $0x160] sm:$0xff]  ;;  %v761_v47 = vld [vmem:[#allocation7 + $0x198] sm:$0xff] }
  0x72   :  { %1456 = vmatpush3.bf16.msra.mxu0 %v1455_v60  ;;  %v960_v35 = vld [vmem:[%s1875_s3 + $0x1] ss:$0 sm:$0xff]  ;;  %v679_v40 = vld [vmem:[#allocation7 + $0x170] sm:$0xff]  ;;  %v763_v50 = vld [vmem:[#allocation7 + $0x1a8] sm:$0xff] }
  0x73   :  { %1458 = vmatprep.subr.bf16.mxu0 %v1457_v62  ;;  %v758_v43 = vld [vmem:[#allocation7 + $0x180] sm:$0xff]  ;;  %v764_v52 = vld [vmem:[#allocation7 + $0x1b0] sm:$0xff]  ;;  %v765_v53 = vld [vmem:[#allocation7 + $0x1b8] sm:$0xff] }
  0x74   :  { %1488 = vmatpush3.bf16.msra.mxu1 %v1487_v61  ;;  %v1566_v46 = vpack.c.bf16 %v759_v44, %v758_v43  ;;  %v762_v49 = vld [vmem:[#allocation7 + $0x1a0] sm:$0xff] }
  0x75   :  { %1490 = vmatprep.subr.bf16.mxu1 %v1489_v1 }
  0x76   :  { %1460 = vmatpush3.bf16.msra.mxu0 %v1459_v4 }
  0x77   :  { %1493 = vmatprep.subr.bf16.mxu0 %v1721_v11 }
  0x78   :  { %1492 = vmatpush3.bf16.msra.mxu1 %v1491_v5 }
  0x79   :  { %403 = vmatmul.mubr.f32.vlgmr.msra.gmra.mrb[2].mxu0 %v61_v6  ;;  %1517 = vmatprep.subr.bf16.mxu1 %v1721_v11 }
  0x7a   :  { %1495 = vmatpush3.bf16.msra.mxu0 %v1494_v12  ;;  %1222 = vmatprep.mubr.msk.f32.mxu0 %vm1722_vm0, %v1723_v33  ;;  %v1539_v12 = vpack.c.bf16 %v587_v10, %v586_v9  ;;  %v852_v9 = vld [vmem:[#allocation7 + $0x208] sm:$0xff]  ;;  %v853_v10 = vld [vmem:[#allocation7 + $0x210] sm:$0xff] }
  0x7b   :  { %473 = vmatmul.mubr.f32.vlgmr.msra.gmra.mrb[2].mxu1 %v63_v7  ;;  %1496 = vmatprep.subr.bf16.mxu0 %v1721_v11 }
  0x7c   :  { %1257 = vmatprep.mubr.msk.f32.mxu1 %vm1722_vm0, %v1723_v33  ;;  %1519 = vmatpush3.bf16.msra.mxu1 %v1518_v37 }
  0x7d   :  { %1520 = vmatprep.subr.bf16.mxu1 %v1721_v11 }
  0x7e   :  { %1498 = vmatpush3.bf16.msra.mxu0 %v1497_v14  ;;  %v666_v14 = vld [vmem:[#allocation7 + $0x108] sm:$0xff] }
  0x7f   :  { %1499 = vmatprep.subr.bf16.mxu0 %v1721_v11  ;;  %v1542_v16 = vpack.c.bf16 %v666_v14, %v665_v13  ;;  %v854_v13 = vld [vmem:[#allocation7 + $0x218] sm:$0xff] }
  0x80   :  { %1522 = vmatpush3.bf16.msra.mxu1 %v1521_v39  ;;  %v1593_v14 = vpack.c.bf16 %v854_v13, %v853_v10 }
  0x81   :  { %1523 = vmatprep.subr.bf16.mxu1 %v1721_v11 }
  0x82   :  { %1501 = vmatpush3.bf16.msra.mxu0 %v1500_v17  ;;  %v668_v17 = vld [vmem:[#allocation7 + $0x118] sm:$0xff] }
  0x83   :  { %1502 = vmatprep.subr.bf16.mxu0 %v1721_v11  ;;  %v1545_v18 = vpack.c.bf16 %v668_v17, %v667_v15  ;;  %v855_v15 = vld [vmem:[#allocation7 + $0x220] sm:$0xff] }
  0x84   :  { %1525 = vmatpush3.bf16.msra.mxu1 %v1524_v42  ;;  %v1563_v42 = vpack.c.bf16 %v680_v41, %v679_v40 }
  0x85   :  { %1526 = vmatprep.subr.bf16.mxu1 %v1721_v11 }
  0x86   :  { %1504 = vmatpush3.bf16.msra.mxu0 %v1503_v20  ;;  %v670_v20 = vld [vmem:[#allocation7 + $0x128] sm:$0xff] }
  0x87   :  { %1505 = vmatprep.subr.bf16.mxu0 %v1721_v11  ;;  %v1548_v21 = vpack.c.bf16 %v670_v20, %v669_v19  ;;  %v859_v20 = vld [vmem:[#allocation7 + $0x240] sm:$0xff] }
  0x88   :  { %1528 = vmatpush3.bf16.msra.mxu1 %v1527_v45  ;;  %v760_v45 = vld [vmem:[#allocation7 + $0x190] sm:$0xff] }
  0x89   :  { %1529 = vmatprep.subr.bf16.mxu1 %v1721_v11 }
  0x8a   :  { %1507 = vmatpush3.bf16.msra.mxu0 %v1506_v23  ;;  %v672_v23 = vld [vmem:[#allocation7 + $0x138] sm:$0xff] }
  0x8b   :  { %1508 = vmatprep.subr.bf16.mxu0 %v1721_v11  ;;  %v1551_v24 = vpack.c.bf16 %v672_v23, %v671_v22  ;;  %v861_v23 = vld [vmem:[#allocation7 + $0x250] sm:$0xff] }
  0x8c   :  { %1531 = vmatpush3.bf16.msra.mxu1 %v1530_v48  ;;  %v1569_v48 = vpack.c.bf16 %v761_v47, %v760_v45 }
  0x8d   :  { %1532 = vmatprep.subr.bf16.mxu1 %v1721_v11 }
  0x8e   :  { %1510 = vmatpush3.bf16.msra.mxu0 %v1509_v26  ;;  %v674_v26 = vld [vmem:[#allocation7 + $0x148] sm:$0xff] }
  0x8f   :  { %1511 = vmatprep.subr.bf16.mxu0 %v1721_v11  ;;  %v1554_v27 = vpack.c.bf16 %v674_v26, %v673_v25  ;;  %v863_v26 = vld [vmem:[#allocation7 + $0x260] sm:$0xff] }
  0x90   :  { %1534 = vmatpush3.bf16.msra.mxu1 %v1533_v51  ;;  %v1572_v51 = vpack.c.bf16 %v763_v50, %v762_v49 }
  0x91   :  { %1535 = vmatprep.subr.bf16.mxu1 %v1721_v11 }
  0x92   :  { %1513 = vmatpush3.bf16.msra.mxu0 %v1512_v29  ;;  %v676_v29 = vld [vmem:[#allocation7 + $0x158] sm:$0xff] }
  0x93   :  { %1514 = vmatprep.subr.bf16.mxu0 %v1721_v11  ;;  %v1557_v30 = vpack.c.bf16 %v676_v29, %v675_v28  ;;  %v962_v29 = vld [vmem:[%s1875_s3 + $0x3] ss:$0 sm:$0xff] }
  0x94   :  { %1537 = vmatpush3.bf16.msra.mxu1 %v1536_v54  ;;  %v1575_v54 = vpack.c.bf16 %v765_v53, %v764_v52 }
  0x95   :  { %1538 = vmatprep.subr.bf16.mxu1 %v1721_v11 }
  0x96   :  { %1516 = vmatpush3.bf16.msra.mxu0 %v1515_v32  ;;  %v678_v32 = vld [vmem:[#allocation7 + $0x168] sm:$0xff] }
  0x97   :  { %1541 = vmatprep.subr.bf16.mxu0 %v1721_v11  ;;  %v1560_v34 = vpack.c.bf16 %v678_v32, %v677_v31 }
  0x98   :  { %1540 = vmatpush3.bf16.msra.mxu1 %v1539_v12 }
  0x99   :  { %1565 = vmatprep.subr.bf16.mxu1 %v1721_v11 }
 0x12c   :  { %v997_v55 = vpop.f32.mrb[0].mxu0 }
 0x12d   :  { %v998_v57 = vpop.f32.mrb[1].mxu0 }
 0x12e   :  { %v1032_v58 = vpop.f32.mrb[0].mxu1  ;;  %v999_v59 = vadd.f32 %v998_v57, %v997_v55  ;;  %v766_v55 = vld [vmem:[#allocation7 + $0x1c0] sm:$0xff] }
 0x12f   :  { %v1033_v60 = vpop.f32.mrb[1].mxu1 }
 0x130   :  { %v1034_v61 = vadd.f32 %v1033_v60, %v1032_v58  ;;  %v265_v62 = vadd.f32 %v999_v59, %v959_v56  ;;  %v767_v56 = vld [vmem:[#allocation7 + $0x1c8] sm:$0xff]  ;;  %v768_v58 = vld [vmem:[#allocation7 + $0x1d0] sm:$0xff]  ;;  %v769_v59 = vld [vmem:[#allocation7 + $0x1d8] sm:$0xff] }
 0x131   :  { %v1578_v57 = vpack.c.bf16 %v767_v56, %v766_v55  ;;  %v1581_v60 = vpack.c.bf16 %v769_v59, %v768_v58 }
 0x132   :  { %v335_v63 = vadd.f32 %v1034_v61, %v265_v62  ;;  %v770_v61 = vld [vmem:[#allocation7 + $0x1e0] sm:$0xff]  ;;  %v771_v62 = vld [vmem:[#allocation7 + $0x1e8] sm:$0xff] }
 0x14c   :  { %v1067_v0 = vpop.f32.mrb[2].mxu0 }
 0x14d   :  { %v1068_v1 = vpop.f32.mrb[3].mxu0 }
 0x14e   :  { %v1102_v2 = vpop.f32.mrb[2].mxu1  ;;  %v1069_v3 = vadd.f32 %v1068_v1, %v1067_v0  ;;  %v961_v0 = vld [vmem:[%s1875_s3 + $0x2] ss:$0 sm:$0xff] }
 0x14f   :  { %v1103_v4 = vpop.f32.mrb[3].mxu1 }
 0x150   :  { %v1104_v5 = vadd.f32 %v1103_v4, %v1102_v2  ;;  %v405_v6 = vadd.f32 %v1069_v3, %v335_v63  ;;  %v1584_v63 = vpack.c.bf16 %v771_v62, %v770_v61 }
 0x152   :  { %v475_v7 = vadd.f32 %v1104_v5, %v405_v6  ;;  %v772_v5 = vld [vmem:[#allocation7 + $0x1f0] sm:$0xff]  ;;  %v773_v6 = vld [vmem:[#allocation7 + $0x1f8] sm:$0xff] }
 0x154   :  { %v478_v8 = vmax.f32 %v475_v7, 0.0  ;;  %v1587_v7 = vpack.c.bf16 %v773_v6, %v772_v5 }
 0x156   :  { %1223 = vmatmul.mubr.f32.vlgmr.msra.gmra.mrb[4].mxu0 %v478_v8  ;;  %v851_v8 = vld [vmem:[#allocation7 + $0x200] sm:$0xff] }
 0x157   :  { %1292 = vmatprep.mubr.msk.f32.mxu0 %vm1722_vm0, %v1723_v33  ;;  %1543 = vmatpush3.bf16.msra.mxu0 %v1542_v16  ;;  %v1590_v12 = vpack.c.bf16 %v852_v9, %v851_v8  ;;  %v856_v16 = vld [vmem:[#allocation7 + $0x228] sm:$0xff] }
 0x158   :  { %1544 = vmatprep.subr.bf16.mxu0 %v1721_v11  ;;  %v1596_v17 = vpack.c.bf16 %v856_v16, %v855_v15 }
 0x15b   :  { %1546 = vmatpush3.bf16.msra.mxu0 %v1545_v18  ;;  %v858_v18 = vld [vmem:[#allocation7 + $0x238] sm:$0xff] }
 0x15c   :  { %1547 = vmatprep.subr.bf16.mxu0 %v1721_v11 }
 0x15f   :  { %1549 = vmatpush3.bf16.msra.mxu0 %v1548_v21  ;;  %v860_v21 = vld [vmem:[#allocation7 + $0x248] sm:$0xff] }
 0x160   :  { %1550 = vmatprep.subr.bf16.mxu0 %v1721_v11  ;;  %v1602_v22 = vpack.c.bf16 %v860_v21, %v859_v20 }
 0x163   :  { %1552 = vmatpush3.bf16.msra.mxu0 %v1551_v24  ;;  %v862_v24 = vld [vmem:[#allocation7 + $0x258] sm:$0xff] }
 0x164   :  { %1553 = vmatprep.subr.bf16.mxu0 %v1721_v11  ;;  %v1605_v25 = vpack.c.bf16 %v862_v24, %v861_v23 }
 0x167   :  { %1555 = vmatpush3.bf16.msra.mxu0 %v1554_v27  ;;  %v864_v27 = vld [vmem:[#allocation7 + $0x268] sm:$0xff] }
 0x168   :  { %1556 = vmatprep.subr.bf16.mxu0 %v1721_v11  ;;  %v1608_v28 = vpack.c.bf16 %v864_v27, %v863_v26 }
 0x16b   :  { %1558 = vmatpush3.bf16.msra.mxu0 %v1557_v30 }
 0x16c   :  { %1559 = vmatprep.subr.bf16.mxu0 %v1721_v11 }
 0x16f   :  { %1561 = vmatpush3.bf16.msra.mxu0 %v1560_v34 }
 0x170   :  { %1562 = vmatprep.subr.bf16.mxu0 %v1721_v11 }
 0x173   :  { %1564 = vmatpush3.bf16.msra.mxu0 %v1563_v42  ;;  %v964_v42 = vld [vmem:[%s1875_s3 + $0x5] ss:$0 sm:$0xff] }
 0x174   :  { %1589 = vmatprep.subr.bf16.mxu0 %v1721_v11 }
 0x229   :  { %v566_v36 = vpop.f32.mrb[4].mxu0 }
 0x22a   :  { %v567_v37 = vadd.f32 %v960_v35, %v566_v36  ;;  %v1224_v38 = vpop.f32.mrb[5].mxu0  ;;  %v865_v35 = vld [vmem:[#allocation7 + $0x270] sm:$0xff]  ;;  %v866_v36 = vld [vmem:[#allocation7 + $0x278] sm:$0xff] }
 0x22b   :  { %v963_v38 = vld [vmem:[%s1875_s3 + $0x4] ss:$0 sm:$0xff] }
 0x22c   :  { %v570_v39 = vmax.f32 %v567_v37, 0.0  ;;  %v1611_v37 = vpack.c.bf16 %v866_v36, %v865_v35 }
 0x22e   :  { %1258 = vmatmul.mubr.f32.vlgmr.msra.gmra.mrb[4].mxu1 %v570_v39 }
 0x22f   :  { %1327 = vmatprep.mubr.msk.f32.mxu1 %vm1722_vm0, %v1723_v33  ;;  %1567 = vmatpush3.bf16.msra.mxu1 %v1566_v46 }
 0x230   :  { %1568 = vmatprep.subr.bf16.mxu1 %v1721_v11 }
 0x233   :  { %1570 = vmatpush3.bf16.msra.mxu1 %v1569_v48 }
 0x234   :  { %1571 = vmatprep.subr.bf16.mxu1 %v1721_v11 }
 0x237   :  { %1573 = vmatpush3.bf16.msra.mxu1 %v1572_v51 }
 0x238   :  { %1574 = vmatprep.subr.bf16.mxu1 %v1721_v11 }
 0x23b   :  { %1576 = vmatpush3.bf16.msra.mxu1 %v1575_v54 }
 0x23c   :  { %1577 = vmatprep.subr.bf16.mxu1 %v1721_v11 }
 0x23f   :  { %1579 = vmatpush3.bf16.msra.mxu1 %v1578_v57 }
 0x240   :  { %1580 = vmatprep.subr.bf16.mxu1 %v1721_v11 }
 0x243   :  { %1582 = vmatpush3.bf16.msra.mxu1 %v1581_v60 }
 0x244   :  { %1583 = vmatprep.subr.bf16.mxu1 %v1721_v11 }
 0x247   :  { %1585 = vmatpush3.bf16.msra.mxu1 %v1584_v63 }
 0x248   :  { %1586 = vmatprep.subr.bf16.mxu1 %v1721_v11 }
 0x24b   :  { %1588 = vmatpush3.bf16.msra.mxu1 %v1587_v7 }
 0x301   :  { %v659_v1 = vpop.f32.mrb[4].mxu1 }
 0x302   :  { %v660_v2 = vadd.f32 %v961_v0, %v659_v1  ;;  %v1259_v3 = vpop.f32.mrb[5].mxu1 }
 0x304   :  { %v663_v4 = vmax.f32 %v660_v2, 0.0 }
 0x306   :  { %1293 = vmatmul.mubr.f32.vlgmr.msra.gmra.mrb[6].mxu0 %v663_v4 }
 0x307   :  { %1362 = vmatprep.mubr.msk.f32.mxu0 %vm1722_vm0, %v1723_v33  ;;  %1591 = vmatpush3.bf16.msra.mxu0 %v1590_v12  ;;  %v857_v33 = vld [vmem:[#allocation7 + $0x230] sm:$0xff] }
 0x308   :  { %1592 = vmatprep.subr.bf16.mxu0 %v1721_v11  ;;  %v1599_v19 = vpack.c.bf16 %v858_v18, %v857_v33 }
 0x30b   :  { %1594 = vmatpush3.bf16.msra.mxu0 %v1593_v14 }
 0x30c   :  { %1595 = vmatprep.subr.bf16.mxu0 %v1721_v11 }
 0x30f   :  { %1597 = vmatpush3.bf16.msra.mxu0 %v1596_v17 }
 0x310   :  { %1598 = vmatprep.subr.bf16.mxu0 %v1721_v11 }
 0x313   :  { %1600 = vmatpush3.bf16.msra.mxu0 %v1599_v19 }
 0x314   :  { %1601 = vmatprep.subr.bf16.mxu0 %v1721_v11 }
 0x317   :  { %1603 = vmatpush3.bf16.msra.mxu0 %v1602_v22 }
 0x318   :  { %1604 = vmatprep.subr.bf16.mxu0 %v1721_v11 }
 0x31b   :  { %1606 = vmatpush3.bf16.msra.mxu0 %v1605_v25 }
 0x31c   :  { %1607 = vmatprep.subr.bf16.mxu0 %v1721_v11 }
 0x31f   :  { %1609 = vmatpush3.bf16.msra.mxu0 %v1608_v28 }
 0x320   :  { %1610 = vmatprep.subr.bf16.mxu0 %v1721_v11 }
 0x323   :  { %1612 = vmatpush3.bf16.msra.mxu0 %v1611_v37 }
 0x3d9   :  { %v752_v30 = vpop.f32.mrb[6].mxu0 }
 0x3da   :  { %v753_v31 = vadd.f32 %v962_v29, %v752_v30  ;;  %v1294_v32 = vpop.f32.mrb[7].mxu0 }
 0x3dc   :  { %v756_v34 = vmax.f32 %v753_v31, 0.0 }
 0x3de   :  { %1328 = vmatmul.mubr.f32.vlgmr.msra.gmra.mrb[6].mxu1 %v756_v34 }
 0x4b1   :  { %v845_v39 = vpop.f32.mrb[6].mxu1 }
 0x4b2   :  { %v846_v40 = vadd.f32 %v963_v38, %v845_v39  ;;  %v1329_v11 = vpop.f32.mrb[7].mxu1 }
 0x4b4   :  { %v849_v41 = vmax.f32 %v846_v40, 0.0 }
 0x4b6   :  { %1363 = vmatmul.mubr.f32.vlgmr.msra.gmra.mrb[8].mxu0 %v849_v41 }
 0x589   :  { %v938_v43 = vpop.f32.mrb[8].mxu0 }
 0x58a   :  { %v939_v44 = vadd.f32 %v964_v42, %v938_v43  ;;  %v1364_v45 = vpop.f32.mrb[9].mxu0 }
 0x58c   :  { %942 = vst [vmem:[#allocation8] sm:$0xff] %v939_v44 }
 0x58d   :  { %1699 = shalt.err (!%p1696_p0)
}
 0x58e   :  { %s1700_s14 = scalar_lea.hbm %s1876_s4, 128 }
 0x58f   :  { %p1701_p1 = scmp.ne.s32.totalorder %s1876_s4, %s1700_s14  ;;  %p1704_p2 = scmp.lt.u32.totalorder %s1700_s14, %s1876_s4 }
 0x591   :  { %p1706_p3 = pnand %p1704_p2, %p1701_p1 }
 0x593   :  { %1709 = shalt.err (!%p1706_p3)
}
 0x594   :  { %952 = dma.vmem_to_hbm [thread:$0]  %s950_s11, 128, %s1876_s4, [#allocation4]  }
 0x595   :  { %1714 = dma.done.wait [#allocation4], 128  }
 0x596   :  { %1715 = vsyncadd [#allocation4], 4294967168 }
 0x597   :  { %956 = vsyncpa [#allocation3], 1 }
 0x598   :  { %957 = vsyncpa [#allocation6], 1 }
 0x599   :  { %958 = vsyncpa [#allocation4], 1 }

</bundles_post_ra>
